<compile_context>
chip_gen: v7x
topology: tpu7x:2x2x1
jax: 0.10.0
libtpu: 0.0.40
codegen_flags: <defaults>
</compile_context>

<pallas_src>
import numpy as np
import jax
import jax.numpy as jnp
from jax import lax
from jax.experimental import pallas as pl
from jax.experimental.pallas import tpu as pltpu


def _patch_mask_kernel(len_keep_ref, noise_ref, noise_t_ref, x_ref, e_ref,
                       xm_ref, mask_ref):
    # len_keep_ref : SMEM (1,) int32            (scalar prefetch)
    # noise_ref    : (TB, L, nvars)
    # noise_t_ref  : (TB, nvars, L)             (same data, pre-transposed)
    # x_ref        : (TB, L, nvars*D)           lane-dense
    # e_ref        : (nvars, nvars*D)           block-diagonal 0/1 expand matrix
    # xm_ref       : (TB, L, nvars*D)
    # mask_ref     : (TB, L, nvars)  float32
    len_keep = len_keep_ref[0]
    tb, L, nvars = noise_ref.shape
    C = x_ref.shape[-1]

    # rank[b, i, v] = #{ j : noise[b, j, v] < noise[b, i, v] }
    # j sits on the lane axis -> dense vector compares + lane-axis reduce (XLU).
    n_i = noise_ref[...][..., None]            # (TB, L, nvars, 1)
    n_j = noise_t_ref[...][:, None, :, :]      # (TB, 1, nvars, L)
    smaller = n_j < n_i                        # (TB, L, nvars, L)
    rank = jnp.sum(smaller.astype(jnp.int32), axis=-1)   # (TB, L, nvars)

    keep_f = (rank < len_keep).astype(jnp.float32)        # exact 0/1
    mask_ref[...] = 1.0 - keep_f

    # Expand each variable's keep flag across its D feature columns on the MXU:
    # (TB*L, nvars) @ (nvars, nvars*D) -> exact 0/1, lane-dense.
    keep_wide = jnp.dot(keep_f.reshape(tb * L, nvars), e_ref[...],
                        preferred_element_type=jnp.float32).reshape(tb, L, C)

    x = x_ref[...]
    xm_ref[...] = jnp.where(keep_wide > 0.5, x, jnp.array(0, dtype=x.dtype))


def _largest_divisor_leq(n, k):
    k = max(1, min(n, int(k)))
    while n % k:
        k -= 1
    return k


def _pick_tb(bs, L, nvars, D, itemsize,
             x_block_target=4 << 20, pair_target=6 << 20):
    """Batches per grid step: large tiles for HBM roofline, VMEM-safe blocks.

    VMEM budget sketch (32 MiB scoped limit): double-buffered x input + x_masked
    output = 4 * x_block, pairwise compare/rank intermediates ~ pair block,
    plus the small keep_wide / noise buffers.
    """
    per_batch_x = L * nvars * D * itemsize
    per_batch_pair = L * L * nvars * 5          # bool compare + int32 rank path
    tb = min(bs,
             max(1, x_block_target // max(per_batch_x, 1)),
             max(1, pair_target // max(per_batch_pair, 1)))
    tb = _largest_divisor_leq(bs, tb)
    # Keep >= 2 grid steps when possible (megacore / v7x has 2 TensorCores).
    if bs >= 2 and bs // tb < 2:
        tb = _largest_divisor_leq(bs, bs // 2)
    return tb


@jax.jit
def patch_mask_pallas(x, noise, len_keep):
    bs, L, nvars, D = x.shape
    C = nvars * D

    x2 = x.reshape(bs, L, C)                           # lane-dense view of x
    noise_t = jnp.swapaxes(noise, 1, 2)                # (bs, nvars, L)
    # Block-diagonal expand matrix E[v, c] = 1 iff c // D == v.
    e = (lax.broadcasted_iota(jnp.int32, (nvars, C), 1) // D
         == lax.broadcasted_iota(jnp.int32, (nvars, C), 0)).astype(jnp.float32)
    len_keep_arr = jnp.asarray(len_keep, jnp.int32).reshape(1)

    tb = _pick_tb(bs, L, nvars, D, x.dtype.itemsize)
    grid = (bs // tb,)

    xm2, mask = pl.pallas_call(
        _patch_mask_kernel,
        out_shape=(
            jax.ShapeDtypeStruct((bs, L, C), x.dtype),       # x_masked (flat)
            jax.ShapeDtypeStruct((bs, L, nvars), jnp.float32),  # mask
        ),
        grid_spec=pltpu.PrefetchScalarGridSpec(
            num_scalar_prefetch=1,
            grid=grid,
            in_specs=[
                pl.BlockSpec((tb, L, nvars), lambda b, lk: (b, 0, 0)),
                pl.BlockSpec((tb, nvars, L), lambda b, lk: (b, 0, 0)),
                pl.BlockSpec((tb, L, C), lambda b, lk: (b, 0, 0)),
                pl.BlockSpec((nvars, C), lambda b, lk: (0, 0)),
            ],
            out_specs=(
                pl.BlockSpec((tb, L, C), lambda b, lk: (b, 0, 0)),
                pl.BlockSpec((tb, L, nvars), lambda b, lk: (b, 0, 0)),
            ),
        ),
        compiler_params=pltpu.CompilerParams(
            dimension_semantics=("parallel",),
            vmem_limit_bytes=32 * 1024 * 1024),
    )(len_keep_arr, noise, noise_t, x2, e)

    return xm2.reshape(bs, L, nvars, D), mask


class PatchMaskPallas:
    """JAX/Pallas port of PatchMaskModule (forward pass)."""

    def __init__(self, min_mask_ratio: float = 0.15, max_mask_ratio: float = 0.55):
        self.min_mask_ratio = min_mask_ratio
        self.max_mask_ratio = max_mask_ratio
        self.is_same_mask_ratio = (min_mask_ratio == max_mask_ratio)

    def __call__(self, x, key):
        bs, L, nvars, D = x.shape
        if self.is_same_mask_ratio:
            mask_ratio = self.max_mask_ratio
        else:
            # Host-side scalar draw mirroring np.random.uniform in the reference.
            mask_ratio = float(np.random.uniform(self.min_mask_ratio,
                                                 self.max_mask_ratio))
        # len_keep is a runtime scalar -> no recompile when it changes.
        len_keep = jnp.int32(int(L * (1 - mask_ratio)))
        noise = jax.random.uniform(key, (bs, L, nvars), dtype=x.dtype)
        return patch_mask_pallas(x, noise, len_keep)


def _reference(x, noise, len_keep):
    # Pure-JAX reference mirroring the PyTorch gather/argsort semantics.
    ids_shuffle = jnp.argsort(noise, axis=1, stable=True)
    ids_restore = jnp.argsort(ids_shuffle, axis=1, stable=True)
    keep = (ids_restore < len_keep)
    mask = 1.0 - keep.astype(jnp.float32)
    x_masked = x * keep.astype(x.dtype)[..., None]
    return x_masked, mask


if __name__ == "__main__":
    np.random.seed(0)                       # deterministic mask_ratio draw
    key = jax.random.PRNGKey(0)
    kx, kn = jax.random.split(key)

    bs, L, nvars, D = 2, 8, 4, 32
    x = jax.random.normal(kx, (bs, L, nvars, D), dtype=jnp.float32)

    module = PatchMaskPallas(min_mask_ratio=0.15, max_mask_ratio=0.55)

    # Reproduce the host-side draw / noise generation explicitly so we can check
    # against the pure-JAX reference with the exact same inputs.
    mask_ratio = float(np.random.uniform(module.min_mask_ratio,
                                         module.max_mask_ratio))
    len_keep = int(L * (1 - mask_ratio))
    noise = jax.random.uniform(kn, (bs, L, nvars), dtype=jnp.float32)

    x_masked, mask = patch_mask_pallas(x, noise, jnp.int32(len_keep))
    jax.block_until_ready((x_masked, mask))

    # Second call with a different len_keep exercises the no-recompile path.
    x_masked2, mask2 = patch_mask_pallas(x, noise, jnp.int32(max(1, len_keep - 1)))
    jax.block_until_ready((x_masked2, mask2))

    x_ref, m_ref = _reference(x, noise, len_keep)
    np.testing.assert_allclose(np.asarray(x_masked), np.asarray(x_ref),
                               rtol=0, atol=0)
    np.testing.assert_allclose(np.asarray(mask), np.asarray(m_ref),
                               rtol=0, atol=0)

    x_ref2, m_ref2 = _reference(x, noise, max(1, len_keep - 1))
    np.testing.assert_allclose(np.asarray(x_masked2), np.asarray(x_ref2),
                               rtol=0, atol=0)
    np.testing.assert_allclose(np.asarray(mask2), np.asarray(m_ref2),
                               rtol=0, atol=0)

    print("KERNEL_OK")
</pallas_src>

<mosaic_0001>
module attributes {stable_mosaic.version = 11 : i64} {
  func.func @_patch_mask_kernel(%arg0: i32, %arg1: memref<1xi32, #tpu.memory_space<smem>>, %arg2: memref<1x8x4xf32, #tpu.memory_space<vmem>>, %arg3: memref<1x4x8xf32, #tpu.memory_space<vmem>>, %arg4: memref<1x8x128xf32, #tpu.memory_space<vmem>>, %arg5: memref<4x128xf32, #tpu.memory_space<vmem>>, %arg6: memref<1x8x128xf32, #tpu.memory_space<vmem>>, %arg7: memref<1x8x4xf32, #tpu.memory_space<vmem>>) attributes {dimension_semantics = [#tpu.dimension_semantics<parallel>], iteration_bounds = array<i64: 2>, scalar_prefetch = 1 : i64, scratch_operands = 0 : i64, tpu.core_type = #tpu.core_type<tc>, window_params = [{transform_indices = @transform_0, window_bounds = array<i64: 1, 8, 4>}, {transform_indices = @transform_1, window_bounds = array<i64: 1, 4, 8>}, {transform_indices = @transform_2, window_bounds = array<i64: 1, 8, 128>}, {pipeline_mode = #tpu.pipeline_mode<synchronous>, transform_indices = @transform_3, window_bounds = array<i64: 4, 128>}, {transform_indices = @transform_4, window_bounds = array<i64: 1, 8, 128>}, {transform_indices = @transform_5, window_bounds = array<i64: 1, 8, 4>}]} {
    %c0 = arith.constant 0 : index
    %0 = memref.load %arg1[%c0] : memref<1xi32, #tpu.memory_space<smem>>
    %c0_0 = arith.constant 0 : index
    %c0_1 = arith.constant 0 : index
    %c0_2 = arith.constant 0 : index
    %1 = vector.load %arg2[%c0_0, %c0_1, %c0_2] : memref<1x8x4xf32, #tpu.memory_space<vmem>>, vector<1x8x4xf32>
    %2 = vector.shape_cast %1 : vector<1x8x4xf32> to vector<1x8x4x1xf32>
    %c0_3 = arith.constant 0 : index
    %c0_4 = arith.constant 0 : index
    %c0_5 = arith.constant 0 : index
    %3 = vector.load %arg3[%c0_3, %c0_4, %c0_5] : memref<1x4x8xf32, #tpu.memory_space<vmem>>, vector<1x4x8xf32>
    %4 = vector.shape_cast %3 : vector<1x4x8xf32> to vector<1x1x4x8xf32>
    %5 = vector.broadcast %4 : vector<1x1x4x8xf32> to vector<1x8x4x8xf32>
    %6 = vector.broadcast %2 : vector<1x8x4x1xf32> to vector<1x8x4x8xf32>
    %7 = arith.cmpf olt, %5, %6 : vector<1x8x4x8xf32>
    %8 = arith.extui %7 : vector<1x8x4x8xi1> to vector<1x8x4x8xi32>
    %cst = arith.constant dense<0> : vector<1x8x4xi32>
    %9 = vector.multi_reduction <add>, %8, %cst [3] : vector<1x8x4x8xi32> to vector<1x8x4xi32>
    %10 = vector.broadcast %0 : i32 to vector<1x8x4xi32>
    %11 = arith.cmpi slt, %9, %10 : vector<1x8x4xi32>
    %12 = arith.extui %11 : vector<1x8x4xi1> to vector<1x8x4xi32>
    %13 = arith.sitofp %12 : vector<1x8x4xi32> to vector<1x8x4xf32>
    %cst_6 = arith.constant 1.000000e+00 : f32
    %14 = vector.broadcast %cst_6 : f32 to vector<1x8x4xf32>
    %15 = arith.subf %14, %13 : vector<1x8x4xf32>
    %c0_7 = arith.constant 0 : index
    %c0_8 = arith.constant 0 : index
    %c0_9 = arith.constant 0 : index
    %16 = vector.load %arg7[%c0_7, %c0_8, %c0_9] : memref<1x8x4xf32, #tpu.memory_space<vmem>>, vector<1x8x4xf32>
    tpu.vector_store %arg7[%c0_7, %c0_8, %c0_9], %15 {strides = array<i32>} : memref<1x8x4xf32, #tpu.memory_space<vmem>>, vector<1x8x4xf32>,
    %17 = vector.shape_cast %13 : vector<1x8x4xf32> to vector<8x4xf32>
    %c0_10 = arith.constant 0 : index
    %c0_11 = arith.constant 0 : index
    %18 = vector.load %arg5[%c0_10, %c0_11] : memref<4x128xf32, #tpu.memory_space<vmem>>, vector<4x128xf32>
    %cst_12 = arith.constant dense<0.000000e+00> : vector<8x128xf32>
    %19 = tpu.matmul %17, %18, %cst_12 {dimension_numbers = #tpu.dot_dimension_numbers<[1], [0], [0], [1], [0, 0, 1, 1], [], []>} : vector<8x4xf32>, vector<4x128xf32>, vector<8x128xf32> -> vector<8x128xf32>
    %20 = vector.shape_cast %19 : vector<8x128xf32> to vector<1x8x128xf32>
    %c0_13 = arith.constant 0 : index
    %c0_14 = arith.constant 0 : index
    %c0_15 = arith.constant 0 : index
    %21 = vector.load %arg4[%c0_13, %c0_14, %c0_15] : memref<1x8x128xf32, #tpu.memory_space<vmem>>, vector<1x8x128xf32>
    %cst_16 = arith.constant 5.000000e-01 : f32
    %22 = vector.broadcast %cst_16 : f32 to vector<1x8x128xf32>
    %23 = arith.cmpf ogt, %20, %22 : vector<1x8x128xf32>
    %cst_17 = arith.constant 0.000000e+00 : f32
    %24 = vector.broadcast %cst_17 : f32 to vector<1x8x128xf32>
    %25 = arith.select %23, %21, %24 : vector<1x8x128xi1>, vector<1x8x128xf32>
    %c0_18 = arith.constant 0 : index
    %c0_19 = arith.constant 0 : index
    %c0_20 = arith.constant 0 : index
    %26 = vector.load %arg6[%c0_18, %c0_19, %c0_20] : memref<1x8x128xf32, #tpu.memory_space<vmem>>, vector<1x8x128xf32>
    tpu.vector_store %arg6[%c0_18, %c0_19, %c0_20], %25 {strides = array<i32>} : memref<1x8x128xf32, #tpu.memory_space<vmem>>, vector<1x8x128xf32>,
    return
  }
  func.func @transform_0(%arg0: i32, %arg1: memref<1xi32, #tpu.memory_space<smem>>) -> (i32, i32, i32) {
    %c0_i32 = arith.constant 0 : i32
    %c0_i32_0 = arith.constant 0 : i32
    %c0_i32_1 = arith.constant 0 : i32
    return %arg0, %c0_i32, %c0_i32_0 : i32, i32, i32
  }
  func.func @transform_1(%arg0: i32, %arg1: memref<1xi32, #tpu.memory_space<smem>>) -> (i32, i32, i32) {
    %c0_i32 = arith.constant 0 : i32
    %c0_i32_0 = arith.constant 0 : i32
    %c0_i32_1 = arith.constant 0 : i32
    return %arg0, %c0_i32, %c0_i32_0 : i32, i32, i32
  }
  func.func @transform_2(%arg0: i32, %arg1: memref<1xi32, #tpu.memory_space<smem>>) -> (i32, i32, i32) {
    %c0_i32 = arith.constant 0 : i32
    %c0_i32_0 = arith.constant 0 : i32
    %c0_i32_1 = arith.constant 0 : i32
    return %arg0, %c0_i32, %c0_i32_0 : i32, i32, i32
  }
  func.func @transform_3(%arg0: i32, %arg1: memref<1xi32, #tpu.memory_space<smem>>) -> (i32, i32) {
    %c0_i32 = arith.constant 0 : i32
    %c0_i32_0 = arith.constant 0 : i32
    %c0_i32_1 = arith.constant 0 : i32
    return %c0_i32, %c0_i32_0 : i32, i32
  }
  func.func @transform_4(%arg0: i32, %arg1: memref<1xi32, #tpu.memory_space<smem>>) -> (i32, i32, i32) {
    %c0_i32 = arith.constant 0 : i32
    %c0_i32_0 = arith.constant 0 : i32
    %c0_i32_1 = arith.constant 0 : i32
    return %arg0, %c0_i32, %c0_i32_0 : i32, i32, i32
  }
  func.func @transform_5(%arg0: i32, %arg1: memref<1xi32, #tpu.memory_space<smem>>) -> (i32, i32, i32) {
    %c0_i32 = arith.constant 0 : i32
    %c0_i32_0 = arith.constant 0 : i32
    %c0_i32_1 = arith.constant 0 : i32
    return %arg0, %c0_i32, %c0_i32_0 : i32, i32, i32
  }
}

</mosaic_0001>

<bundles_post_ra>
// kernel: patch_mask_pallas.1
= control target key start
LH: loop header
LB: loop body
LE: loop exit
PB: predicated region body
PF: predicated region fallthrough
CT: control target
= control target key end

     0   :  { %s864_s23 = smov 0   ;;  %s965_s0 = inlined_call_operand.<no memory space> [shape: s32[1], index: 0, kind: input, shape index: {}]   ;;  %s966_s1 = inlined_call_operand.vmem [shape: f32[2,8,4], index: 1, kind: input, shape index: {}]   ;;  %s967_s2 = inlined_call_operand.vmem [shape: f32[2,4,8], index: 2, kind: input, shape index: {}]   ;;  %s968_s3 = inlined_call_operand.vmem [shape: f32[2,8,128], index: 3, kind: input, shape index: {}]   ;;  %s969_s4 = inlined_call_operand.vmem [shape: f32[4,128], index: 4, kind: input, shape index: {}]   ;;  %s970_s5 = inlined_call_operand.vmem [shape: f32[2,8,128], index: 5, kind: output, shape index: {0}]   ;;  %s971_s6 = inlined_call_operand.vmem [shape: f32[2,8,4], index: 6, kind: output, shape index: {1}]  }
   0x1   :  { %12 = sst [smem:[#allocation3]] %s965_s0 }
   0x2 LB: > { %s775_s24 = sadd.s32 4294967295, %s821_s23   ;;  %p779_p0 = scmp.ge.s32.totalorder %s821_s23, 1  ;;  %s821_s23 = sphi %s864_s23, %s18_s23  }
   0x3   : > { %p209_p1 = scmp.lt.s32.totalorder %s821_s23, 3 }
   0x5   : > { %p210_p2 = pnand %p779_p0, %p209_p1 }
   0x6   : > { %p247_p3 = scmp.lt.s32.totalorder (!%p210_p2), %s775_s24, 1  ;;  %v269_v0 = vlaneseq (!%p210_p2)  ;;  %vm342_vm0 = vcmask (!%p210_p2), 60416   ;;  %v823_v24 = vmov (!%p210_p2), 0   ;;  %vm589_vm9 = vcmask (!%p210_p2), 1043456   ;;  %s267_s10 = sld [smem:[#allocation3]] (!%p210_p2) }
   0x7   : > { %213 = sbr.rel (%p210_p2) target bundleno = 540 (0x21c), region = 36  ;;  %vm825_vm10 = vmmov (!%p210_p2), 0  }
   0x8   : > { %v270_v1 = vshrl.u32 (!%p210_p2), %v269_v0, 7  ;;  %v489_v2 = vand.u32 (!%p210_p2), 127, %v269_v0 }
   0xa   : > { %v271_v3 = vsub.s32 (!%p210_p2), 0, %v270_v1  ;;  %v877_v4 = vsub.s32 (!%p210_p2), %v489_v2, %v270_v1  ;;  %v285_v5 = vsub.s32 (!%p210_p2), 2, %v270_v1  ;;  %v278_v6 = vsub.s32 (!%p210_p2), 1, %v270_v1 }
   0xb   : > { %v292_v7 = vsub.s32 (!%p210_p2), 3, %v270_v1  ;;  %v299_v13 = vsub.s32 (!%p210_p2), 4, %v270_v1  ;;  %v306_v14 = vsub.s32 (!%p210_p2), 5, %v270_v1  ;;  %v313_v17 = vsub.s32 (!%p210_p2), 6, %v270_v1 }
   0xc   : > { %v320_v18 = vsub.s32 (!%p210_p2), 7, %v270_v1 }
   0xe   : > { %s973_s24 = smov (!%p247_p3, %s775_s24), 1 }
   0xf   : > { %s875_s0 = sshll.u32 %s973_s24, 3  ;;  %s781_s28 = sshll.u32 %s973_s24, 2 }
  0x10   : > { %s250_s27 = scalar_lea.vmem %s966_s1, %s875_s0  ;;  %s254_s7 = scalar_lea.vmem %s967_s2, %s781_s28 }
  0x11   : > { %v268_v8 = vld [vmem:[%s250_s27] sm:$0xff]  ;;  %s266_s13 = scalar_lea.vmem %s971_s6, %s875_s0  ;;  %s258_s16 = scalar_lea.vmem %s968_s3, %s875_s0 }
  0x12   : > { %v272_v9 = vrot.slane %v268_v8, %v271_v3  ;;  %v286_v10 = vrot.slane %v268_v8, %v285_v5  ;;  %v279_v11 = vrot.slane %v268_v8, %v278_v6  ;;  %v293_v12 = vrot.slane %v268_v8, %v292_v7  ;;  %v325_v21 = vld [vmem:[%s254_s7] sm:$0xf]  ;;  %s262_s19 = scalar_lea.vmem %s970_s5, %s875_s0 }
  0x13   : > { %v300_v15 = vrot.slane %v268_v8, %v299_v13  ;;  %v307_v16 = vrot.slane %v268_v8, %v306_v14  ;;  %v314_v19 = vrot.slane %v268_v8, %v313_v17  ;;  %v321_v20 = vrot.slane %v268_v8, %v320_v18  ;;  %v539_v17 = vld [vmem:[%s969_s4] sm:$0xf] }
  0x14   : > { %274 = vbcast.lane.b32.xlu0 %v272_v9, 256  ;;  %288 = vbcast.lane.b32.xlu1 %v286_v10, 256  ;;  %v824_v10 = vmov 0.0  }
  0x15   : > { %799 = vmatprep.subr.mxu0 %v824_v10  ;;  %801 = vmatprep.mubr.msk.f32.mxu0 %vm825_vm10, %v824_v10 }
  0x16   : > { %800 = vmatpush3.msk.msra.mxu0 %vm589_vm9, %v539_v17  ;;  %vm537_vm9 = vcmask 31744  }
  0x18   : > { %281 = vbcast.lane.b32.xlu0 %v279_v11, 256  ;;  %295 = vbcast.lane.b32.xlu1 %v293_v12, 256 }
  0x1c   : > { %302 = vbcast.lane.b32.xlu0 %v300_v15, 256  ;;  %309 = vbcast.lane.b32.xlu1 %v307_v16, 256 }
  0x20   : > { %316 = vbcast.lane.b32.xlu0 %v314_v19, 256  ;;  %323 = vbcast.lane.b32.xlu1 %v321_v20, 256 }
  0x86   : > { %v275_v22 = vpop.permute.xlu0 %274  ;;  %v289_v23 = vpop.permute.xlu1 %288 }
  0x87   : > { %vm326_vm1 = vcmp.lt.f32.partialorder %v325_v21, %v275_v22  ;;  %vm328_vm2 = vcmp.lt.f32.partialorder %v325_v21, %v289_v23 }
  0x88   : > { %v334_v25 = vsel %vm326_vm1, 1, %v823_v24  ;;  %v336_v26 = vsel %vm328_vm2, 1, %v823_v24  ;;  %vm524_vm1 = vcmask 1042434   ;;  %vm526_vm2 = vcmask 1043459  }
  0x89   : > { %v343_v27 = vsel %vm342_vm0, %v334_v25, 0  ;;  %v369_v28 = vsel %vm342_vm0, %v336_v26, 0 }
  0x8a   : > { %v282_v29 = vpop.permute.xlu0 %281  ;;  %v345_v30 = vshrl.u32 %v343_v27, 16  ;;  %v296_v31 = vpop.permute.xlu1 %295  ;;  %v371_v32 = vshrl.u32 %v369_v28, 16  ;;  %v344_v44 = vand.u32 65535, %v343_v27  ;;  %v370_v52 = vand.u32 65535, %v369_v28 }
  0x8b   : > { %vm327_vm3 = vcmp.lt.f32.partialorder %v325_v21, %v282_v29  ;;  %vm329_vm4 = vcmp.lt.f32.partialorder %v325_v21, %v296_v31 }
  0x8c   : > { %v335_v33 = vsel %vm327_vm3, 1, %v823_v24  ;;  %v347_v34 = vcvt.s32.f32 %v345_v30  ;;  %v337_v35 = vsel %vm329_vm4, 1, %v823_v24  ;;  %v373_v37 = vcvt.s32.f32 %v371_v32 }
  0x8d   : > { %v356_v36 = vsel %vm342_vm0, %v335_v33, 0  ;;  %v382_v42 = vsel %vm342_vm0, %v337_v35, 0  ;;  %v346_v50 = vcvt.s32.f32 %v344_v44  ;;  %v372_v57 = vcvt.s32.f32 %v370_v52 }
  0x8e   : > { %350 = vadd.xlane.f32.xlu0 %v347_v34  ;;  %v358_v38 = vshrl.u32 %v356_v36, 16  ;;  %v357_v39 = vand.u32 65535, %v356_v36  ;;  %v303_v40 = vpop.permute.xlu0 %302  ;;  %v310_v41 = vpop.permute.xlu1 %309  ;;  %v384_v47 = vshrl.u32 %v382_v42, 16  ;;  %v383_v58 = vand.u32 65535, %v382_v42 }
  0x8f   : > { %vm330_vm5 = vcmp.lt.f32.partialorder %v325_v21, %v303_v40  ;;  %vm331_vm6 = vcmp.lt.f32.partialorder %v325_v21, %v310_v41  ;;  %vm528_vm3 = vcmask 1044484   ;;  %vm530_vm4 = vcmask 1045509  }
  0x90   : > { %v360_v43 = vcvt.s32.f32 %v358_v38  ;;  %v338_v45 = vsel %vm330_vm5, 1, %v823_v24  ;;  %v359_v46 = vcvt.s32.f32 %v357_v39  ;;  %v339_v51 = vsel %vm331_vm6, 1, %v823_v24 }
  0x91   : > { %v395_v49 = vsel %vm342_vm0, %v338_v45, 0  ;;  %v386_v53 = vcvt.s32.f32 %v384_v47  ;;  %v408_v56 = vsel %vm342_vm0, %v339_v51, 0  ;;  %v385_v63 = vcvt.s32.f32 %v383_v58 }
  0x92   : > { %376 = vadd.xlane.f32.xlu0 %v373_v37  ;;  %363 = vadd.xlane.f32.xlu1 %v360_v43  ;;  %v317_v48 = vpop.permute.xlu0 %316  ;;  %v397_v54 = vshrl.u32 %v395_v49, 16  ;;  %v324_v55 = vpop.permute.xlu1 %323  ;;  %v410_v61 = vshrl.u32 %v408_v56, 16  ;;  %v396_v1 = vand.u32 65535, %v395_v49  ;;  %v409_v7 = vand.u32 65535, %v408_v56 }
  0x93   : > { %vm332_vm7 = vcmp.lt.f32.partialorder %v325_v21, %v317_v48  ;;  %vm333_vm8 = vcmp.lt.f32.partialorder %v325_v21, %v324_v55  ;;  %v900_v38 = vstv %s267_s10  ;;  %vm532_vm6 = vcmask 1046534  }
  0x94   : > { %v340_v59 = vsel %vm332_vm7, 1, %v823_v24  ;;  %v399_v60 = vcvt.s32.f32 %v397_v54  ;;  %v341_v0 = vsel %vm333_vm8, 1, %v823_v24  ;;  %v412_v2 = vcvt.s32.f32 %v410_v61 }
  0x95   : > { %v421_v62 = vsel %vm342_vm0, %v340_v59, 0  ;;  %v434_v5 = vsel %vm342_vm0, %v341_v0, 0  ;;  %v398_v6 = vcvt.s32.f32 %v396_v1  ;;  %v411_v11 = vcvt.s32.f32 %v409_v7 }
  0x96   : > { %348 = vadd.xlane.f32.xlu0 %v346_v50  ;;  %361 = vadd.xlane.f32.xlu1 %v359_v46  ;;  %v423_v3 = vshrl.u32 %v421_v62, 16  ;;  %v436_v9 = vshrl.u32 %v434_v5, 16  ;;  %v422_v12 = vand.u32 65535, %v421_v62  ;;  %v435_v15 = vand.u32 65535, %v434_v5 }
  0x97   : > { %vm522_vm0 = vcmask 1041409   ;;  %vm534_vm7 = vcmask 1047559  }
  0x98   : > { %v425_v8 = vcvt.s32.f32 %v423_v3  ;;  %v438_v13 = vcvt.s32.f32 %v436_v9  ;;  %v424_v14 = vcvt.s32.f32 %v422_v12  ;;  %v437_v16 = vcvt.s32.f32 %v435_v15 }
  0x9a   : > { %389 = vadd.xlane.f32.xlu0 %v386_v53  ;;  %374 = vadd.xlane.f32.xlu1 %v372_v57 }
  0x9e   : > { %387 = vadd.xlane.f32.xlu1 %v385_v63  ;;  %402 = vadd.xlane.f32.xlu0 %v399_v60 }
  0xa2   : > { %415 = vadd.xlane.f32.xlu0 %v412_v2  ;;  %400 = vadd.xlane.f32.xlu1 %v398_v6 }
  0xa6   : > { %413 = vadd.xlane.f32.xlu1 %v411_v11  ;;  %428 = vadd.xlane.f32.xlu0 %v425_v8 }
  0xaa   : > { %441 = vadd.xlane.f32.xlu0 %v438_v13  ;;  %426 = vadd.xlane.f32.xlu1 %v424_v14 }
  0xae   : > { %439 = vadd.xlane.f32.xlu0 %v437_v16 }
 0x11b   : > { %v351_v18 = vpop.xlane.xlu0 %350 }
 0x11c   : > { %v353_v24 = vcvt.f32.s32 %v351_v18 }
 0x11e   : > { %v354_v30 = vshll.u32 %v353_v24, 16 }
 0x11f   : > { %v364_v19 = vpop.xlane.xlu1 %363  ;;  %v377_v20 = vpop.xlane.xlu0 %376 }
 0x120   : > { %v366_v21 = vcvt.f32.s32 %v364_v19  ;;  %v379_v31 = vcvt.f32.s32 %v377_v20 }
 0x122   : > { %v367_v25 = vshll.u32 %v366_v21, 16  ;;  %v380_v40 = vshll.u32 %v379_v31, 16 }
 0x123   : > { %v362_v22 = vpop.xlane.xlu1 %361  ;;  %v349_v23 = vpop.xlane.xlu0 %348 }
 0x124   : > { %v365_v26 = vcvt.f32.s32 %v362_v22  ;;  %v352_v27 = vcvt.f32.s32 %v349_v23 }
 0x126   : > { %v368_v33 = vadd.s32 %v367_v25, %v365_v26  ;;  %v355_v34 = vadd.s32 %v354_v30, %v352_v27 }
 0x127   : > { %v375_v28 = vpop.xlane.xlu1 %374  ;;  %v390_v29 = vpop.xlane.xlu0 %389 }
 0x128   : > { %v392_v32 = vcvt.f32.s32 %v390_v29  ;;  %v378_v35 = vcvt.f32.s32 %v375_v28  ;;  %vm449_vm11 = vcmp.lt.s32.totalorder %v368_v33, %v900_v38  ;;  %vm448_vm12 = vcmp.lt.s32.totalorder %v355_v34, %v900_v38 }
 0x129   : > { %v786_v51 = vsel %vm449_vm11, 1.0, %v824_v10  ;;  %v785_v52 = vsel %vm448_vm12, 1.0, %v824_v10 }
 0x12a   : > { %v393_v42 = vshll.u32 %v392_v32, 16  ;;  %v381_v43 = vadd.s32 %v380_v40, %v378_v35  ;;  %v473_v58 = vsub.f32 1.0, %v786_v51  ;;  %v472_v61 = vsub.f32 1.0, %v785_v52 }
 0x12b   : > { %v388_v36 = vpop.xlane.xlu1 %387  ;;  %v403_v37 = vpop.xlane.xlu0 %402  ;;  %v555_v6 = vrot.slane %v786_v51, %v877_v4  ;;  %v551_v7 = vrot.slane %v785_v52, %v877_v4 }
 0x12c   : > { %v391_v39 = vcvt.f32.s32 %v388_v36  ;;  %v405_v41 = vcvt.f32.s32 %v403_v37  ;;  %vm450_vm13 = vcmp.lt.s32.totalorder %v381_v43, %v900_v38  ;;  %v497_v11 = vrot.slane %v473_v58, %v877_v4 }
 0x12d   : > { %v787_v59 = vsel %vm450_vm13, 1.0, %v824_v10  ;;  %v493_v14 = vrot.slane %v472_v61, %v877_v4  ;;  %v580_v22 = vsel %vm522_vm0, %v555_v6, %v551_v7 }
 0x12e   : > { %v394_v46 = vadd.s32 %v393_v42, %v391_v39  ;;  %v406_v47 = vshll.u32 %v405_v41, 16  ;;  %v474_v8 = vsub.f32 1.0, %v787_v59  ;;  %v559_v15 = vrot.slane %v787_v59, %v877_v4 }
 0x12f   : > { %v401_v44 = vpop.xlane.xlu1 %400  ;;  %v416_v45 = vpop.xlane.xlu0 %415  ;;  %v523_v33 = vsel %vm522_vm0, %v497_v11, %v493_v14 }
 0x130   : > { %v404_v48 = vcvt.f32.s32 %v401_v44  ;;  %v418_v49 = vcvt.f32.s32 %v416_v45  ;;  %vm451_vm14 = vcmp.lt.s32.totalorder %v394_v46, %v900_v38  ;;  %v501_v23 = vrot.slane %v474_v8, %v877_v4 }
 0x131   : > { %v788_v62 = vsel %vm451_vm14, 1.0, %v824_v10  ;;  %v581_v30 = vsel %vm524_vm1, %v559_v15, %v580_v22 }
 0x132   : > { %v407_v50 = vadd.s32 %v406_v47, %v404_v48  ;;  %v419_v55 = vshll.u32 %v418_v49, 16  ;;  %v475_v12 = vsub.f32 1.0, %v788_v62  ;;  %v563_v16 = vrot.slane %v788_v62, %v877_v4 }
 0x133   : > { %v414_v53 = vpop.xlane.xlu1 %413  ;;  %v429_v54 = vpop.xlane.xlu0 %428  ;;  %v525_v36 = vsel %vm524_vm1, %v501_v23, %v523_v33 }
 0x134   : > { %vm452_vm15 = vcmp.lt.s32.totalorder %v407_v50, %v900_v38  ;;  %v417_v56 = vcvt.f32.s32 %v414_v53  ;;  %v431_v57 = vcvt.f32.s32 %v429_v54  ;;  %v505_v26 = vrot.slane %v475_v12, %v877_v4 }
 0x135   : > { %v789_v63 = vsel %vm452_vm15, 1.0, %v824_v10  ;;  %v582_v34 = vsel %vm526_vm2, %v563_v16, %v581_v30 }
 0x136   : > { %v420_v60 = vadd.s32 %v419_v55, %v417_v56  ;;  %v432_v2 = vshll.u32 %v431_v57, 16  ;;  %v476_v17 = vsub.f32 1.0, %v789_v63  ;;  %v567_v24 = vrot.slane %v789_v63, %v877_v4 }
 0x137   : > { %v427_v0 = vpop.xlane.xlu1 %426  ;;  %v442_v1 = vpop.xlane.xlu0 %441  ;;  %v527_v41 = vsel %vm526_vm2, %v505_v26, %v525_v36 }
 0x138   : > { %vm453_vm5 = vcmp.lt.s32.totalorder %v420_v60, %v900_v38  ;;  %v430_v3 = vcvt.f32.s32 %v427_v0  ;;  %v444_v5 = vcvt.f32.s32 %v442_v1  ;;  %v509_v31 = vrot.slane %v476_v17, %v877_v4 }
 0x139   : > { %v790_v9 = vsel %vm453_vm5, 1.0, %v824_v10  ;;  %v583_v40 = vsel %vm528_vm3, %v567_v24, %v582_v34 }
 0x13a   : > { %v433_v13 = vadd.s32 %v432_v2, %v430_v3  ;;  %v477_v19 = vsub.f32 1.0, %v790_v9  ;;  %v445_v20 = vshll.u32 %v444_v5, 16  ;;  %v571_v27 = vrot.slane %v790_v9, %v877_v4 }
 0x13b   : > { %v440_v18 = vpop.xlane.xlu0 %439  ;;  %v529_v45 = vsel %vm528_vm3, %v509_v31, %v527_v41 }
 0x13c   : > { %vm454_vm8 = vcmp.lt.s32.totalorder %v433_v13, %v900_v38  ;;  %v443_v21 = vcvt.f32.s32 %v440_v18  ;;  %v513_v35 = vrot.slane %v477_v19, %v877_v4  ;;  %v584_v44 = vsel %vm530_vm4, %v571_v27, %v583_v40 }
 0x13d   : > { %v791_v25 = vsel %vm454_vm8, 1.0, %v824_v10 }
 0x13e   : > { %v478_v28 = vsub.f32 1.0, %v791_v25  ;;  %v446_v29 = vadd.s32 %v445_v20, %v443_v21  ;;  %v575_v32 = vrot.slane %v791_v25, %v877_v4 }
 0x140   : > { %vm455_vm10 = vcmp.lt.s32.totalorder %v446_v29, %v900_v38  ;;  %v517_v37 = vrot.slane %v478_v28, %v877_v4  ;;  %v585_v38 = vsel %vm532_vm6, %v575_v32, %v584_v44 }
 0x141   : > { %v792_v39 = vsel %vm455_vm10, 1.0, %v824_v10  ;;  %v531_v10 = vsel %vm530_vm4, %v513_v35, %v529_v45 }
 0x142   : > { %v479_v42 = vsub.f32 1.0, %v792_v39  ;;  %v579_v43 = vrot.slane %v792_v39, %v877_v4  ;;  %v533_v48 = vsel %vm532_vm6, %v517_v37, %v531_v10 }
 0x144   : > { %v521_v46 = vrot.slane %v479_v42, %v877_v4  ;;  %v586_v47 = vsel %vm534_vm7, %v579_v43, %v585_v38  ;;  %v663_v4 = vld [vmem:[%s258_s16] sm:$0xff] }
 0x145   : > { %802 = vmatmul.mubr.msk.f32.vlgmr.msra.gmra.mrb[0].mxu0 %vm537_vm9, %v586_v47 }
 0x146   : > { %v535_v49 = vsel %vm534_vm7, %v521_v46, %v533_v48 }
 0x147   : > { %538 = vst.msk [vmem:[%s266_s13] sm:$0xff] %vm537_vm9, %v535_v49 }
 0x218   : > { %v659_v50 = vpop.f32.mrb[0].mxu0 }
 0x219   : > { %vm664_vm11 = vcmp.gt.f32.partialorder %v659_v50, 0.5  ;;  %v803_v51 = vpop.f32.mrb[1].mxu0 }
 0x21a   : > { %v665_v52 = vsel %vm664_vm11, %v663_v4, 0.0 }
 0x21b   : > { %666 = vst [vmem:[%s262_s19] sm:$0xff] %v665_v52 }
 0x21c PF: > { %s18_s23 = sadd.s32 1, %s821_s23  }
 0x21d   : > { %p15_p4 = scmp.ge.s32.totalorder %s18_s23, 4  }
 0x21f   :  { %17 = sbr.rel (!%p15_p4) target bundleno = 2 (0x2), region = 84 }

</bundles_post_ra>
